<compile_context>
chip_gen: v7x
topology: tpu7x:2x2x1
jax: 0.10.0
libtpu: 0.0.40
codegen_flags: <defaults>
</compile_context>

<pallas_src>
import functools

import jax
import jax.numpy as jnp
from jax.experimental import pallas as pl
from jax.experimental.pallas import tpu as pltpu


def _round_up(x: int, m: int) -> int:
    return ((x + m - 1) // m) * m


def _vmem_capacity_bytes() -> int:
    """Per-core VMEM capacity; falls back to 128 MiB if the query fails."""
    try:
        return int(pltpu.get_tpu_info().vmem_capacity_bytes)
    except Exception:
        return 128 << 20


def _mlp_kernel(x_ref, w13_ref, w2_ref, o_ref, acc_ref, *, tn):
    """Grid = (token tiles i, inter tiles j).  Reduction over j is last.

    x_ref  : (tm, dim)          token tile, original dtype (cast in-kernel)
    w13_ref: (1, dim, 2*tn)     contiguous packed [W1^T | W3^T] slab for tile j
    w2_ref : (tn, dim)          W2^T slab for tile j (row slab -> contiguous)
    o_ref  : (tm, dim)          output tile (written on last j)
    acc_ref: (tm, dim) f32      down-projection accumulator (VMEM scratch)
    """
    j = pl.program_id(1)

    @pl.when(j == 0)
    def _():
        acc_ref[...] = jnp.zeros_like(acc_ref)

    w13 = w13_ref[0]                                  # (dim, 2*tn)
    # Cheap VPU cast, hidden under the MXU; avoids a separate HBM cast pass.
    x = x_ref[...].astype(w13.dtype)
    # Single fused MXU pass: (tm, dim) @ (dim, 2*tn) -> [gate | up], f32 accum.
    gate_up = jnp.dot(x, w13, preferred_element_type=jnp.float32)
    gate = gate_up[:, :tn]                            # lane-aligned (tn % 128 == 0) slices
    up = gate_up[:, tn:]
    # SiLU(gate) * up in f32 (VPU + EUP).
    hidden = (gate * jax.nn.sigmoid(gate)) * up
    # Down projection for this inter block, accumulated in f32.
    acc_ref[...] += jnp.dot(hidden.astype(w2_ref.dtype), w2_ref[...],
                            preferred_element_type=jnp.float32)

    @pl.when(j == pl.num_programs(1) - 1)
    def _():
        o_ref[...] = acc_ref[...].astype(o_ref.dtype)


def prepare_mlp_weights(w1, w2, w3, *, tn=512, compute_dtype=jnp.bfloat16):
    """One-time weight packing (call OUTSIDE the per-step path).

    PyTorch (out_features, in_features) layouts:
      w1, w3: (inter, dim)   gate / up projections
      w2    : (dim, inter)   down projection
    Returns (w13, w2t):
      w13: (n_inter, dim, 2*tn) -- per inter-tile contiguous slab
           [:, :, :tn] = W1^T tile, [:, :, tn:] = W3^T tile.
      w2t: (inter_p, dim) = W2^T, zero-padded along inter.
    """
    inter, dim = w1.shape
    assert w3.shape == (inter, dim) and w2.shape == (dim, inter)
    assert tn % 128 == 0, "tn must be a multiple of 128 (lane tiling)"

    tn = min(tn, _round_up(inter, 128))
    inter_p = _round_up(inter, tn)
    pad = inter_p - inter

    # TODO(synk): fp8/int8 quantized weight path (act_quant / fp8_gemm) not
    # implemented; weights here are >1 byte, matching the F.linear branch.
    w1t = w1.astype(compute_dtype).T   # (dim, inter)
    w3t = w3.astype(compute_dtype).T   # (dim, inter)
    w2t = w2.astype(compute_dtype).T   # (inter, dim)
    if pad:
        w1t = jnp.pad(w1t, ((0, 0), (0, pad)))
        w3t = jnp.pad(w3t, ((0, 0), (0, pad)))
        w2t = jnp.pad(w2t, ((0, pad), (0, 0)))

    nt = inter_p // tn
    w1_tiles = w1t.reshape(dim, nt, tn).transpose(1, 0, 2)   # (nt, dim, tn)
    w3_tiles = w3t.reshape(dim, nt, tn).transpose(1, 0, 2)   # (nt, dim, tn)
    w13 = jnp.concatenate([w1_tiles, w3_tiles], axis=-1)     # (nt, dim, 2*tn)
    return w13, w2t


@functools.partial(jax.jit, static_argnames=("tm",))
def mlp_pallas_prepared(x, w13, w2t, *, tm=None):
    """Forward pass with pre-packed weights.  x: (T, dim)."""
    T, dim = x.shape
    n_inter, dim_w, two_tn = w13.shape
    tn = two_tn // 2
    inter_p = n_inter * tn
    assert dim_w == dim and two_tn == 2 * tn
    assert w2t.shape == (inter_p, dim)

    vmem_cap = _vmem_capacity_bytes()

    # Token tile: auto-size from VMEM capacity (512 on 128 MiB parts raises
    # arithmetic intensity past the v6e roofline crossover; 256 on 64 MiB v7x),
    # then clamp to a multiple of 128 for MXU M-utilization on small T.
    if tm is None:
        tm = 512 if vmem_cap >= (100 << 20) else 256
    tm = max(128, min(tm, _round_up(T, 128)))

    wsize = jnp.dtype(w13.dtype).itemsize
    w2size = jnp.dtype(w2t.dtype).itemsize
    xsize = jnp.dtype(x.dtype).itemsize

    def _budget(tm_, io_bufs):
        return (io_bufs * tm_ * dim * xsize          # x tiles
                + 2 * dim * 2 * tn * wsize           # packed gate/up weight tiles
                + 2 * tn * dim * w2size              # down-proj weight tiles
                + io_bufs * tm_ * dim * xsize        # output tiles
                + tm_ * dim * 4                      # f32 accumulator
                + tm_ * 2 * tn * 4                   # gate_up intermediate (f32)
                + tm_ * tn * w2size)                 # hidden intermediate (bf16)

    headroom = 4 << 20
    # x/out block index is constant along j, so single-buffering them costs one
    # missed overlap per n_inter steps; use it only when VMEM is tight (v7x).
    io_bufs = 2
    if _budget(tm, 2) * 3 // 2 > vmem_cap - headroom:
        io_bufs = 1
    while tm > 128 and _budget(tm, io_bufs) * 5 // 4 > vmem_cap - headroom:
        tm //= 2

    T_p = _round_up(T, tm)
    xc = x
    if T_p != T:
        xc = jnp.pad(x, ((0, T_p - T), (0, 0)))      # zero rows, sliced off below

    n_row = T_p // tm

    vmem_bytes = _budget(tm, io_bufs)
    vmem_limit = int(min(max(vmem_bytes * 3 // 2, 32 << 20),
                         vmem_cap - (2 << 20)))

    # Advisory cost estimate: weights are re-streamed once per row tile.
    flops = 2 * T_p * dim * inter_p * 3
    weight_bytes = (w13.size * wsize + w2t.size * w2size)
    bytes_accessed = int(n_row * weight_bytes
                         + T_p * dim * xsize          # activation read
                         + T_p * dim * xsize)         # output write
    transcendentals = 2 * T_p * inter_p               # sigmoid ~ exp + recip

    x_map = lambda i, j: (i, 0)
    if io_bufs == 1:
        x_spec = pl.BlockSpec((tm, dim), x_map, pipeline_mode=pl.Buffered(1))
        out_spec = pl.BlockSpec((tm, dim), x_map, pipeline_mode=pl.Buffered(1))
    else:
        x_spec = pl.BlockSpec((tm, dim), x_map)
        out_spec = pl.BlockSpec((tm, dim), x_map)

    out = pl.pallas_call(
        functools.partial(_mlp_kernel, tn=tn),
        out_shape=jax.ShapeDtypeStruct((T_p, dim), x.dtype),
        grid_spec=pltpu.PrefetchScalarGridSpec(
            num_scalar_prefetch=0,
            grid=(n_row, n_inter),                               # reduction last
            in_specs=[
                x_spec,                                          # token tile
                pl.BlockSpec((1, dim, 2 * tn), lambda i, j: (j, 0, 0)),  # contiguous [W1^T|W3^T] slab
                pl.BlockSpec((tn, dim), lambda i, j: (j, 0)),    # W2^T slab
            ],
            out_specs=out_spec,
            scratch_shapes=[pltpu.VMEM((tm, dim), jnp.float32)],
        ),
        compiler_params=pltpu.CompilerParams(
            dimension_semantics=("parallel", "arbitrary"),
            vmem_limit_bytes=vmem_limit),
        cost_estimate=pl.CostEstimate(
            flops=flops,
            transcendentals=transcendentals,
            bytes_accessed=bytes_accessed),
    )(xc, w13, w2t)
    return out[:T]


def mlp_pallas(x, w1, w2, w3, *, tm=None, tn=512, compute_dtype=jnp.bfloat16):
    """Convenience wrapper: pack weights once, run the prepared forward.

    Matches MLP.forward semantics: w2(silu(w1(x)) * w3(x)) over the last dim.
    """
    w13, w2t = prepare_mlp_weights(w1, w2, w3, tn=tn, compute_dtype=compute_dtype)
    orig_shape = x.shape
    out = mlp_pallas_prepared(x.reshape(-1, orig_shape[-1]), w13, w2t, tm=tm)
    return out.reshape(orig_shape)


def mlp_reference(x, w1, w2, w3, compute_dtype=jnp.bfloat16):
    """Pure-JAX reference mirroring the kernel's bf16-matmul / f32-accum path."""
    xc = x.astype(compute_dtype)
    gate = jnp.dot(xc, w1.astype(compute_dtype).T,
                   preferred_element_type=jnp.float32)
    up = jnp.dot(xc, w3.astype(compute_dtype).T,
                 preferred_element_type=jnp.float32)
    hidden = (gate * jax.nn.sigmoid(gate)) * up
    out = jnp.dot(hidden.astype(compute_dtype), w2.astype(compute_dtype).T,
                  preferred_element_type=jnp.float32)
    return out.astype(x.dtype)


if __name__ == "__main__":
    key = jax.random.PRNGKey(0)

    # --- Case 1: shapes implied by the module forward (toy sizes) ------------
    batch, seq, dim, inter_dim = 2, 8, 128, 256
    kx, k1, k2, k3, key = jax.random.split(key, 5)
    x = jax.random.normal(kx, (batch, seq, dim), dtype=jnp.float32)
    # PyTorch shapes: (out_features, in_features).
    w1 = jax.random.normal(k1, (inter_dim, dim), dtype=jnp.float32) * (1.0 / dim) ** 0.5
    w2 = jax.random.normal(k2, (dim, inter_dim), dtype=jnp.float32) * (1.0 / inter_dim) ** 0.5
    w3 = jax.random.normal(k3, (inter_dim, dim), dtype=jnp.float32) * (1.0 / dim) ** 0.5

    out = jax.block_until_ready(mlp_pallas(x, w1, w2, w3))
    ref = mlp_reference(x.reshape(-1, dim), w1, w2, w3).reshape(x.shape)
    assert out.shape == x.shape
    assert jnp.allclose(out, ref, atol=2e-2, rtol=2e-2), "case 1 mismatch"

    # --- Case 2: ragged token count + multiple inter tiles (exercises padding
    #     and the accumulator loop over the "arbitrary" inter axis) -----------
    T2, dim2, inter2 = 19, 256, 384
    kx, k1, k2, k3, key = jax.random.split(key, 5)
    x2 = jax.random.normal(kx, (T2, dim2), dtype=jnp.float32)
    w1b = jax.random.normal(k1, (inter2, dim2), dtype=jnp.float32) * (1.0 / dim2) ** 0.5
    w2b = jax.random.normal(k2, (dim2, inter2), dtype=jnp.float32) * (1.0 / inter2) ** 0.5
    w3b = jax.random.normal(k3, (inter2, dim2), dtype=jnp.float32) * (1.0 / dim2) ** 0.5

    w13b, w2tb = prepare_mlp_weights(w1b, w2b, w3b, tn=128)   # 3 inter tiles
    out2 = jax.block_until_ready(mlp_pallas_prepared(x2, w13b, w2tb))
    ref2 = mlp_reference(x2, w1b, w2b, w3b)
    assert out2.shape == (T2, dim2)
    assert jnp.allclose(out2, ref2, atol=2e-2, rtol=2e-2), "case 2 mismatch"

    print("KERNEL_OK")
</pallas_src>

<mosaic_0001>
module attributes {stable_mosaic.version = 11 : i64} {
  func.func @_mlp_kernel(%arg0: i32, %arg1: i32, %arg2: memref<128x128xf32, #tpu.memory_space<vmem>>, %arg3: memref<1x128x512xbf16, #tpu.memory_space<vmem>>, %arg4: memref<256x128xbf16, #tpu.memory_space<vmem>>, %arg5: memref<128x128xf32, #tpu.memory_space<vmem>>, %arg6: memref<128x128xf32, #tpu.memory_space<vmem>>) attributes {dimension_semantics = [#tpu.dimension_semantics<parallel>, #tpu.dimension_semantics<arbitrary>], iteration_bounds = array<i64: 1, 1>, scalar_prefetch = 0 : i64, scratch_operands = 1 : i64, tpu.core_type = #tpu.core_type<tc>, window_params = [{transform_indices = @transform_0, window_bounds = array<i64: 128, 128>}, {transform_indices = @transform_1, window_bounds = array<i64: 1, 128, 512>}, {transform_indices = @transform_2, window_bounds = array<i64: 256, 128>}, {transform_indices = @transform_3, window_bounds = array<i64: 128, 128>}]} {
    %c0_i32 = arith.constant 0 : i32
    %0 = arith.cmpi eq, %arg1, %c0_i32 : i32
    %1 = arith.extui %0 : i1 to i32
    %c0_i32_0 = arith.constant 0 : i32
    %2 = arith.cmpi ne, %1, %c0_i32_0 : i32
    scf.if %2 {
      %cst_15 = arith.constant 0.000000e+00 : f32
      %26 = vector.broadcast %cst_15 : f32 to vector<128x128xf32>
      %c0_16 = arith.constant 0 : index
      %c0_17 = arith.constant 0 : index
      %27 = vector.load %arg6[%c0_16, %c0_17] : memref<128x128xf32, #tpu.memory_space<vmem>>, vector<128x128xf32>
      tpu.vector_store %arg6[%c0_16, %c0_17], %26 {strides = array<i32>} : memref<128x128xf32, #tpu.memory_space<vmem>>, vector<128x128xf32>,
    } else {
    }
    %c0 = arith.constant 0 : index
    %c0_1 = arith.constant 0 : index
    %c0_2 = arith.constant 0 : index
    %3 = vector.load %arg3[%c0, %c0_1, %c0_2] : memref<1x128x512xbf16, #tpu.memory_space<vmem>>, vector<1x128x512xbf16>
    %4 = vector.shape_cast %3 : vector<1x128x512xbf16> to vector<128x512xbf16>
    %c0_3 = arith.constant 0 : index
    %c0_4 = arith.constant 0 : index
    %5 = vector.load %arg2[%c0_3, %c0_4] : memref<128x128xf32, #tpu.memory_space<vmem>>, vector<128x128xf32>
    %6 = arith.truncf %5 : vector<128x128xf32> to vector<128x128xbf16>
    %cst = arith.constant dense<0.000000e+00> : vector<128x512xf32>
    %7 = tpu.matmul %6, %4, %cst {dimension_numbers = #tpu.dot_dimension_numbers<[1], [0], [0], [1], [0, 0, 1, 1], [], []>} : vector<128x128xbf16>, vector<128x512xbf16>, vector<128x512xf32> -> vector<128x512xf32>
    %8 = vector.extract_strided_slice %7 {offsets = [0, 0], sizes = [128, 256], strides = [1, 1]} : vector<128x512xf32> to vector<128x256xf32>
    %9 = vector.extract_strided_slice %7 {offsets = [0, 256], sizes = [128, 256], strides = [1, 1]} : vector<128x512xf32> to vector<128x256xf32>
    %10 = arith.negf %8 : vector<128x256xf32>
    %11 = math.exp %10 : vector<128x256xf32>
    %cst_5 = arith.constant 1.000000e+00 : f32
    %12 = vector.broadcast %cst_5 : f32 to vector<128x256xf32>
    %13 = arith.addf %12, %11 : vector<128x256xf32>
    %14 = arith.divf %12, %13 : vector<128x256xf32>
    %15 = arith.mulf %8, %14 : vector<128x256xf32>
    %16 = arith.mulf %15, %9 : vector<128x256xf32>
    %c0_6 = arith.constant 0 : index
    %c0_7 = arith.constant 0 : index
    %17 = vector.load %arg6[%c0_6, %c0_7] : memref<128x128xf32, #tpu.memory_space<vmem>>, vector<128x128xf32>
    %18 = arith.truncf %16 : vector<128x256xf32> to vector<128x256xbf16>
    %c0_8 = arith.constant 0 : index
    %c0_9 = arith.constant 0 : index
    %19 = vector.load %arg4[%c0_8, %c0_9] : memref<256x128xbf16, #tpu.memory_space<vmem>>, vector<256x128xbf16>
    %cst_10 = arith.constant dense<0.000000e+00> : vector<128x128xf32>
    %20 = tpu.matmul %18, %19, %cst_10 {dimension_numbers = #tpu.dot_dimension_numbers<[1], [0], [0], [1], [0, 0, 1, 1], [], []>} : vector<128x256xbf16>, vector<256x128xbf16>, vector<128x128xf32> -> vector<128x128xf32>
    %21 = arith.addf %17, %20 : vector<128x128xf32>
    %c0_11 = arith.constant 0 : index
    %c0_12 = arith.constant 0 : index
    %22 = vector.load %arg6[%c0_11, %c0_12] : memref<128x128xf32, #tpu.memory_space<vmem>>, vector<128x128xf32>
    tpu.vector_store %arg6[%c0_11, %c0_12], %21 {strides = array<i32>} : memref<128x128xf32, #tpu.memory_space<vmem>>, vector<128x128xf32>,
    %c0_i32_13 = arith.constant 0 : i32
    %23 = arith.cmpi eq, %arg1, %c0_i32_13 : i32
    %24 = arith.extui %23 : i1 to i32
    %c0_i32_14 = arith.constant 0 : i32
    %25 = arith.cmpi ne, %24, %c0_i32_14 : i32
    scf.if %25 {
      %c0_15 = arith.constant 0 : index
      %c0_16 = arith.constant 0 : index
      %26 = vector.load %arg6[%c0_15, %c0_16] : memref<128x128xf32, #tpu.memory_space<vmem>>, vector<128x128xf32>
      %c0_17 = arith.constant 0 : index
      %c0_18 = arith.constant 0 : index
      %27 = vector.load %arg5[%c0_17, %c0_18] : memref<128x128xf32, #tpu.memory_space<vmem>>, vector<128x128xf32>
      tpu.vector_store %arg5[%c0_17, %c0_18], %26 {strides = array<i32>} : memref<128x128xf32, #tpu.memory_space<vmem>>, vector<128x128xf32>,
    } else {
    }
    return
  }
  func.func @transform_0(%arg0: i32, %arg1: i32) -> (i32, i32) {
    %c0_i32 = arith.constant 0 : i32
    %c0_i32_0 = arith.constant 0 : i32
    return %arg0, %c0_i32 : i32, i32
  }
  func.func @transform_1(%arg0: i32, %arg1: i32) -> (i32, i32, i32) {
    %c0_i32 = arith.constant 0 : i32
    %c0_i32_0 = arith.constant 0 : i32
    %c0_i32_1 = arith.constant 0 : i32
    return %arg1, %c0_i32, %c0_i32_0 : i32, i32, i32
  }
  func.func @transform_2(%arg0: i32, %arg1: i32) -> (i32, i32) {
    %c0_i32 = arith.constant 0 : i32
    %c0_i32_0 = arith.constant 0 : i32
    return %arg1, %c0_i32 : i32, i32
  }
  func.func @transform_3(%arg0: i32, %arg1: i32) -> (i32, i32) {
    %c0_i32 = arith.constant 0 : i32
    %c0_i32_0 = arith.constant 0 : i32
    return %arg0, %c0_i32 : i32, i32
  }
}

</mosaic_0001>

<bundles_post_ra>
// kernel: mlp_pallas_prepared.1
= control target key start
LH: loop header
LB: loop body
LE: loop exit
PB: predicated region body
PF: predicated region fallthrough
CT: control target
= control target key end

     0   :  { %8 = vsyncpa [#allocation4], 0  ;;  %s1456_s12 = smov [#allocation3]   ;;  %s1851_s0 = inlined_call_operand.vmem [shape: f32[128,128], index: 0, kind: input, shape index: {}]   ;;  %s1852_s1 = inlined_call_operand.hbm [shape: bf16[1,128,512], index: 1, kind: input, shape index: {}]   ;;  %s1853_s2 = inlined_call_operand.vmem [shape: bf16[256,128], index: 2, kind: input, shape index: {}]   ;;  %s1854_s3 = inlined_call_operand.vmem [shape: f32[128,128], index: 3, kind: output, shape index: {}]  }
   0x1   :  { %s16_s13 = sshll.u32 %s1456_s12, 4  ;;  %s1432_s16 = scalar_lea.hbm %s1852_s1, 4096  ;;  %s17_s13 = int_to_ptr.vmem [resolvable:$true] %s16_s13 }
   0x2   :  { %p1433_p0 = scmp.ne.s32.totalorder %s1852_s1, %s1432_s16  ;;  %p1436_p1 = scmp.lt.u32.totalorder %s1432_s16, %s1852_s1 }
   0x4   :  { %p1438_p2 = pnand %p1436_p1, %p1433_p0 }
   0x6   :  { %1441 = shalt.err (!%p1438_p2)
}
   0x7   :  { %s1442_s21 = scalar_lea.vmem %s17_s13, 4096  ;;  %p1447_p4 = scmp.lt.s32.totalorder %s17_s13, %s17_s13 }
   0x8   :  { %p1443_p3 = scmp.ne.s32.totalorder %s17_s13, %s1442_s21  ;;  %p1448_p5 = scmp.lt.s32.totalorder %s1442_s21, %s1442_s21 }
   0xa   :  { %p1449_p6 = por %p1448_p5, %p1447_p4 }
   0xc   :  { %p1450_p7 = pnand %p1449_p6, %p1443_p3 }
   0xe   :  { %1453 = shalt.err (!%p1450_p7)
}
   0xf   :  { %s1457_s22 = smov 256   ;;  %s1458_s23 = smov 16  }
  0x10   :  { %22 = dma.hbm_to_vmem [thread:$0]  %s1852_s1, 4096, %s17_s13, [#allocation4], %s1457_s22, %s1457_s22, %s1458_s23  }
  0x11   :  { %1454 = dma.done.wait [#allocation4], 4096  }
  0x12   :  { %1455 = vsyncadd [#allocation4], 4294963200  ;;  %v1459_v0 = vmov 0   ;;  %v1240_v1 = vld [vmem:[#allocation3 + $0x4] ss:$16 sps:$4 sm:$0xff]   ;;  %v82_v18 = vld [vmem:[%s1851_s0 + $0x8] sm:$0xff] }
  0x13   :  { %297 = vmatprep.mubr.bf16.mxu0 %v1459_v0  ;;  %337 = vmatprep.mubr.bf16.mxu1 %v1459_v0  ;;  %v1242_v2 = vld [vmem:[#allocation3] ss:$16 sps:$4 sm:$0xff]   ;;  %v1243_v3 = vld [vmem:[#allocation3 + $0x24] ss:$16 sps:$4 sm:$0xff]   ;;  %v90_v20 = vld [vmem:[%s1851_s0 + $0x48] sm:$0xff] }
  0x14   :  { %265 = vmatprep.subr.bf16.mxu0 %v1240_v1  ;;  %1220 = vmatprep.subr.bf16.mxu1 %v1240_v1  ;;  %v1245_v4 = vld [vmem:[#allocation3 + $0x20] ss:$16 sps:$4 sm:$0xff]   ;;  %v1246_v5 = vld [vmem:[#allocation3 + $0x44] ss:$16 sps:$4 sm:$0xff]   ;;  %v1266_v21 = vld [vmem:[#allocation3 + $0xc] ss:$16 sps:$4 sm:$0xff]  }
  0x15   :  { %266 = vmatpush1.bf16.msra.mxu0 %v1242_v2  ;;  %1228 = vmatpush1.bf16.msra.mxu1 %v1242_v2  ;;  %v1248_v6 = vld [vmem:[#allocation3 + $0x40] ss:$16 sps:$4 sm:$0xff]   ;;  %v1249_v7 = vld [vmem:[#allocation3 + $0x64] ss:$16 sps:$4 sm:$0xff]   ;;  %v1264_v22 = vld [vmem:[#allocation3 + $0x8] ss:$16 sps:$4 sm:$0xff]  }
  0x16   :  { %267 = vmatprep.subr.bf16.mxu0 %v1243_v3  ;;  %1221 = vmatprep.subr.bf16.mxu1 %v1243_v3  ;;  %v1251_v8 = vld [vmem:[#allocation3 + $0x60] ss:$16 sps:$4 sm:$0xff]   ;;  %v1252_v9 = vld [vmem:[#allocation3 + $0x84] ss:$16 sps:$4 sm:$0xff]   ;;  %v1269_v25 = vld [vmem:[#allocation3 + $0x2c] ss:$16 sps:$4 sm:$0xff]  }
  0x17   :  { %v1254_v10 = vld [vmem:[#allocation3 + $0x80] ss:$16 sps:$4 sm:$0xff]   ;;  %v1255_v11 = vld [vmem:[#allocation3 + $0xa4] ss:$16 sps:$4 sm:$0xff]   ;;  %v1267_v26 = vld [vmem:[#allocation3 + $0x28] ss:$16 sps:$4 sm:$0xff]  }
  0x18   :  { %v1257_v12 = vld [vmem:[#allocation3 + $0xa0] ss:$16 sps:$4 sm:$0xff]   ;;  %v1258_v13 = vld [vmem:[#allocation3 + $0xc4] ss:$16 sps:$4 sm:$0xff]   ;;  %v84_v28 = vld [vmem:[%s1851_s0 + $0x18] sm:$0xff] }
  0x19   :  { %268 = vmatpush1.bf16.msra.mxu0 %v1245_v4  ;;  %1229 = vmatpush1.bf16.msra.mxu1 %v1245_v4  ;;  %v1260_v14 = vld [vmem:[#allocation3 + $0xc0] ss:$16 sps:$4 sm:$0xff]   ;;  %v1261_v15 = vld [vmem:[#allocation3 + $0xe4] ss:$16 sps:$4 sm:$0xff]   ;;  %v92_v30 = vld [vmem:[%s1851_s0 + $0x58] sm:$0xff] }
  0x1a   :  { %269 = vmatprep.subr.bf16.mxu0 %v1246_v5  ;;  %1222 = vmatprep.subr.bf16.mxu1 %v1246_v5  ;;  %v1263_v16 = vld [vmem:[#allocation3 + $0xe0] ss:$16 sps:$4 sm:$0xff]   ;;  %v1272_v31 = vld [vmem:[#allocation3 + $0x4c] ss:$16 sps:$4 sm:$0xff]   ;;  %v1270_v34 = vld [vmem:[#allocation3 + $0x48] ss:$16 sps:$4 sm:$0xff]  }
  0x1b   :  { %v81_v17 = vld [vmem:[%s1851_s0] sm:$0xff]  ;;  %v83_v27 = vld [vmem:[%s1851_s0 + $0x10] sm:$0xff]  ;;  %v1275_v35 = vld [vmem:[#allocation3 + $0x6c] ss:$16 sps:$4 sm:$0xff]  }
  0x1c   :  { %v89_v19 = vld [vmem:[%s1851_s0 + $0x40] sm:$0xff]  ;;  %v1506_v23 = vpack.c.bf16 %v82_v18, %v81_v17  ;;  %v91_v29 = vld [vmem:[%s1851_s0 + $0x50] sm:$0xff]  ;;  %v98_v32 = vpack.c.bf16 %v84_v28, %v83_v27  ;;  %v1273_v36 = vld [vmem:[#allocation3 + $0x68] ss:$16 sps:$4 sm:$0xff]  }
  0x1d   :  { %270 = vmatpush1.bf16.msra.mxu0 %v1248_v6  ;;  %1230 = vmatpush1.bf16.msra.mxu1 %v1248_v6  ;;  %v1508_v24 = vpack.c.bf16 %v90_v20, %v89_v19  ;;  %v102_v33 = vpack.c.bf16 %v92_v30, %v91_v29  ;;  %v85_v37 = vld [vmem:[%s1851_s0 + $0x20] sm:$0xff]  ;;  %v86_v38 = vld [vmem:[%s1851_s0 + $0x28] sm:$0xff]  ;;  %v87_v47 = vld [vmem:[%s1851_s0 + $0x30] sm:$0xff] }
  0x1e   :  { %271 = vmatprep.subr.bf16.mxu0 %v1249_v7  ;;  %1223 = vmatprep.subr.bf16.mxu1 %v1249_v7  ;;  %v93_v39 = vld [vmem:[%s1851_s0 + $0x60] sm:$0xff]  ;;  %v94_v40 = vld [vmem:[%s1851_s0 + $0x68] sm:$0xff]  ;;  %v99_v42 = vpack.c.bf16 %v86_v38, %v85_v37  ;;  %v88_v48 = vld [vmem:[%s1851_s0 + $0x38] sm:$0xff] }
  0x1f   :  { %v1278_v41 = vld [vmem:[#allocation3 + $0x8c] ss:$16 sps:$4 sm:$0xff]   ;;  %v103_v43 = vpack.c.bf16 %v94_v40, %v93_v39  ;;  %v1276_v44 = vld [vmem:[#allocation3 + $0x88] ss:$16 sps:$4 sm:$0xff]   ;;  %v95_v49 = vld [vmem:[%s1851_s0 + $0x70] sm:$0xff]  ;;  %v100_v52 = vpack.c.bf16 %v88_v48, %v87_v47 }
  0x20   :  { %v1281_v45 = vld [vmem:[#allocation3 + $0xac] ss:$16 sps:$4 sm:$0xff]   ;;  %v1279_v46 = vld [vmem:[#allocation3 + $0xa8] ss:$16 sps:$4 sm:$0xff]   ;;  %v1288_v57 = vld [vmem:[%s1853_s2 + $0x40] sm:$0xff]  }
  0x21   :  { %272 = vmatpush1.bf16.msra.mxu0 %v1251_v8  ;;  %1231 = vmatpush1.bf16.msra.mxu1 %v1251_v8  ;;  %v96_v50 = vld [vmem:[%s1851_s0 + $0x78] sm:$0xff]  ;;  %v1289_v58 = vld [vmem:[%s1853_s2] sm:$0xff]   ;;  %v1290_v59 = vld [vmem:[%s1853_s2 + $0x48] sm:$0xff]  }
  0x22   :  { %273 = vmatprep.subr.bf16.mxu0 %v1252_v9  ;;  %1224 = vmatprep.subr.bf16.mxu1 %v1252_v9  ;;  %v1284_v51 = vld [vmem:[#allocation3 + $0xcc] ss:$16 sps:$4 sm:$0xff]   ;;  %v104_v53 = vpack.c.bf16 %v96_v50, %v95_v49  ;;  %v1282_v54 = vld [vmem:[#allocation3 + $0xc8] ss:$16 sps:$4 sm:$0xff]   ;;  %v1292_v61 = vld [vmem:[%s1853_s2 + $0x50] sm:$0xff]  }
  0x23   :  { %v1287_v55 = vld [vmem:[#allocation3 + $0xec] ss:$16 sps:$4 sm:$0xff]   ;;  %v1285_v56 = vld [vmem:[#allocation3 + $0xe8] ss:$16 sps:$4 sm:$0xff]   ;;  %v1293_v62 = vld [vmem:[%s1853_s2 + $0x10] sm:$0xff]  }
  0x24   :  { %v1291_v60 = vld [vmem:[%s1853_s2 + $0x8] sm:$0xff]   ;;  %v1294_v63 = vld [vmem:[%s1853_s2 + $0x58] sm:$0xff]   ;;  %v1296_v1 = vld [vmem:[%s1853_s2 + $0x60] sm:$0xff]  }
  0x25   :  { %274 = vmatpush1.bf16.msra.mxu0 %v1254_v10  ;;  %1232 = vmatpush1.bf16.msra.mxu1 %v1254_v10  ;;  %v1297_v2 = vld [vmem:[%s1853_s2 + $0x20] sm:$0xff]   ;;  %v1298_v3 = vld [vmem:[%s1853_s2 + $0x68] sm:$0xff]   ;;  %v1300_v5 = vld [vmem:[%s1853_s2 + $0x70] sm:$0xff]  }
  0x26   :  { %275 = vmatprep.subr.bf16.mxu0 %v1255_v11  ;;  %1225 = vmatprep.subr.bf16.mxu1 %v1255_v11  ;;  %v1299_v4 = vld [vmem:[%s1853_s2 + $0x28] sm:$0xff]   ;;  %v1301_v6 = vld [vmem:[%s1853_s2 + $0x30] sm:$0xff]   ;;  %v1302_v7 = vld [vmem:[%s1853_s2 + $0x78] sm:$0xff]  }
  0x27   :  { %v1303_v8 = vld [vmem:[%s1853_s2 + $0x38] sm:$0xff]  }
  0x29   :  { %276 = vmatpush1.bf16.msra.mxu0 %v1257_v12  ;;  %1233 = vmatpush1.bf16.msra.mxu1 %v1257_v12 }
  0x2a   :  { %277 = vmatprep.subr.bf16.mxu0 %v1258_v13  ;;  %1226 = vmatprep.subr.bf16.mxu1 %v1258_v13 }
  0x2d   :  { %278 = vmatpush1.bf16.msra.mxu0 %v1260_v14  ;;  %1234 = vmatpush1.bf16.msra.mxu1 %v1260_v14 }
  0x2e   :  { %279 = vmatprep.subr.bf16.mxu0 %v1261_v15  ;;  %1227 = vmatprep.subr.bf16.mxu1 %v1261_v15 }
  0x31   :  { %280 = vmatpush1.bf16.msra.mxu0 %v1263_v16  ;;  %1235 = vmatpush1.bf16.msra.mxu1 %v1263_v16 }
  0x32   :  { %378 = vmatprep.subr.bf16.mxu1 %v1266_v21  ;;  %1156 = vmatprep.subr.bf16.mxu0 %v1288_v57 }
  0x34   :  { %298 = vmatmul.mubr.bf16.vlgmr.msra.gmra.mrb[0].mxu0 %v1506_v23  ;;  %338 = vmatmul.mubr.bf16.vlgmr.msra.gmra.mrb[0].mxu1 %v1508_v24 }
  0x35   :  { %379 = vmatpush1.bf16.msra.mxu1 %v1264_v22  ;;  %307 = vmatprep.mubr.bf16.mxu0 %v1459_v0 }
  0x36   :  { %380 = vmatprep.subr.bf16.mxu1 %v1269_v25  ;;  %347 = vmatprep.mubr.bf16.mxu1 %v1459_v0 }
  0x37   :  { %1157 = vmatpush3.bf16.msra.mxu0 %v1289_v58 }
  0x38   :  { %1158 = vmatprep.subr.bf16.mxu0 %v1290_v59 }
  0x39   :  { %381 = vmatpush1.bf16.msra.mxu1 %v1267_v26 }
  0x3a   :  { %382 = vmatprep.subr.bf16.mxu1 %v1272_v31 }
  0x3b   :  { %1159 = vmatpush3.bf16.msra.mxu0 %v1291_v60 }
  0x3c   :  { %308 = vmatmul.mubr.bf16.gmra.mrb[4].mxu0 %v98_v32  ;;  %348 = vmatmul.mubr.bf16.gmra.mrb[4].mxu1 %v102_v33 }
  0x3d   :  { %383 = vmatpush1.bf16.msra.mxu1 %v1270_v34  ;;  %317 = vmatprep.mubr.bf16.mxu0 %v1459_v0 }
  0x3e   :  { %384 = vmatprep.subr.bf16.mxu1 %v1275_v35  ;;  %357 = vmatprep.mubr.bf16.mxu1 %v1459_v0 }
  0x3f   :  { %1160 = vmatprep.subr.bf16.mxu0 %v1292_v61 }
  0x40   :  { %1161 = vmatpush3.bf16.msra.mxu0 %v1293_v62 }
  0x41   :  { %385 = vmatpush1.bf16.msra.mxu1 %v1273_v36  ;;  %1162 = vmatprep.subr.bf16.mxu0 %v1294_v63 }
  0x42   :  { %386 = vmatprep.subr.bf16.mxu1 %v1278_v41 }
  0x44   :  { %318 = vmatmul.mubr.bf16.gmra.mrb[8].mxu0 %v99_v42  ;;  %358 = vmatmul.mubr.bf16.gmra.mrb[8].mxu1 %v103_v43 }
  0x45   :  { %387 = vmatpush1.bf16.msra.mxu1 %v1276_v44  ;;  %327 = vmatprep.mubr.bf16.mxu0 %v1459_v0 }
  0x46   :  { %388 = vmatprep.subr.bf16.mxu1 %v1281_v45  ;;  %367 = vmatprep.mubr.bf16.mxu1 %v1459_v0 }
  0x49   :  { %389 = vmatpush1.bf16.msra.mxu1 %v1279_v46 }
  0x4a   :  { %390 = vmatprep.subr.bf16.mxu1 %v1284_v51 }
  0x4c   :  { %328 = vmatmul.mubr.bf16.gmra.mrb[12].mxu0 %v100_v52  ;;  %368 = vmatmul.mubr.bf16.gmra.mrb[12].mxu1 %v104_v53 }
  0x4d   :  { %391 = vmatpush1.bf16.msra.mxu1 %v1282_v54  ;;  %410 = vmatprep.mubr.bf16.mxu1 %v1459_v0 }
  0x4e   :  { %392 = vmatprep.subr.bf16.mxu1 %v1287_v55 }
  0x51   :  { %393 = vmatpush1.bf16.msra.mxu1 %v1285_v56 }
  0x54   :  { %411 = vmatmul.mubr.bf16.vlgmr.msra.gmra.mrb[16].mxu1 %v1506_v23 }
  0x55   :  { %420 = vmatprep.mubr.bf16.mxu1 %v1459_v0 }
  0x5c   :  { %421 = vmatmul.mubr.bf16.gmra.mrb[20].mxu1 %v98_v32 }
  0x5d   :  { %430 = vmatprep.mubr.bf16.mxu1 %v1459_v0 }
  0x64   :  { %431 = vmatmul.mubr.bf16.gmra.mrb[24].mxu1 %v99_v42 }
  0x65   :  { %440 = vmatprep.mubr.bf16.mxu1 %v1459_v0 }
  0x6c   :  { %441 = vmatmul.mubr.bf16.gmra.mrb[28].mxu1 %v100_v52 }
  0x6d   :  { %450 = vmatprep.mubr.bf16.mxu1 %v1459_v0 }
  0x74   :  { %451 = vmatmul.mubr.bf16.gmra.mrb[32].mxu1 %v1508_v24 }
  0x75   :  { %460 = vmatprep.mubr.bf16.mxu1 %v1459_v0 }
  0x7c   :  { %461 = vmatmul.mubr.bf16.gmra.mrb[36].mxu1 %v102_v33 }
  0x7d   :  { %470 = vmatprep.mubr.bf16.mxu1 %v1459_v0 }
  0x84   :  { %471 = vmatmul.mubr.bf16.gmra.mrb[40].mxu1 %v103_v43 }
  0x85   :  { %480 = vmatprep.mubr.bf16.mxu1 %v1459_v0  ;;  %v1295_v0 = vld [vmem:[%s1853_s2 + $0x18] sm:$0xff]  }
  0x86   :  { %1163 = vmatpush3.bf16.msra.mxu0 %v1295_v0 }
  0x87   :  { %1164 = vmatprep.subr.bf16.mxu0 %v1296_v1 }
  0x8a   :  { %1165 = vmatpush3.bf16.msra.mxu0 %v1297_v2 }
  0x8b   :  { %1166 = vmatprep.subr.bf16.mxu0 %v1298_v3 }
  0x8c   :  { %481 = vmatmul.mubr.bf16.gmra.mrb[44].mxu1 %v104_v53 }
  0x8e   :  { %1167 = vmatpush3.bf16.msra.mxu0 %v1299_v4 }
  0x8f   :  { %1168 = vmatprep.subr.bf16.mxu0 %v1300_v5 }
  0x92   :  { %1169 = vmatpush3.bf16.msra.mxu0 %v1301_v6 }
  0x93   :  { %1170 = vmatprep.subr.bf16.mxu0 %v1302_v7 }
  0x96   :  { %1171 = vmatpush3.bf16.msra.mxu0 %v1303_v8 }
 0x107   :  { %v1612_v9 = vpop.f32.mrb[0].mxu0  ;;  %v1614_v10 = vpop.f32.mrb[0].mxu1 }
 0x108   :  { %v1108_v11 = vmul.f32 -1.442695, %v1612_v9  ;;  %v1617_v12 = vpop.f32.mrb[1].mxu0  ;;  %v1619_v13 = vpop.f32.mrb[1].mxu1  ;;  %v1124_v21 = vmul.f32 -1.442695, %v1614_v10 }
 0x109   :  { %v1109_v14 = vmul.f32 -1.442695, %v1617_v12  ;;  %v1622_v15 = vpop.f32.mrb[2].mxu0  ;;  %v1624_v16 = vpop.f32.mrb[2].mxu1  ;;  %v1125_v27 = vmul.f32 -1.442695, %v1619_v13 }
 0x10a   :  { %1304 = vpow2.f32 %v1108_v11  ;;  %v1110_v17 = vmul.f32 -1.442695, %v1622_v15  ;;  %v1627_v18 = vpop.f32.mrb[3].mxu0  ;;  %v1629_v19 = vpop.f32.mrb[3].mxu1  ;;  %v1126_v34 = vmul.f32 -1.442695, %v1624_v16 }
 0x10b   :  { %1306 = vpow2.f32 %v1109_v14  ;;  %v1111_v20 = vmul.f32 -1.442695, %v1627_v18  ;;  %v1127_v36 = vmul.f32 -1.442695, %v1629_v19 }
 0x10c   :  { %1308 = vpow2.f32 %v1110_v17 }
 0x10d   :  { %1310 = vpow2.f32 %v1111_v20 }
 0x10f   :  { %v1633_v22 = vpop.f32.mrb[4].mxu0  ;;  %v1635_v23 = vpop.f32.mrb[4].mxu1 }
 0x110   :  { %v1112_v24 = vmul.f32 -1.442695, %v1633_v22  ;;  %v1638_v25 = vpop.f32.mrb[5].mxu0  ;;  %v1640_v26 = vpop.f32.mrb[5].mxu1  ;;  %v1128_v43 = vmul.f32 -1.442695, %v1635_v23 }
 0x111   :  { %v1113_v28 = vmul.f32 -1.442695, %v1638_v25  ;;  %v1644_v29 = vpop.f32.mrb[6].mxu0  ;;  %v1646_v30 = vpop.f32.mrb[6].mxu1  ;;  %v1129_v51 = vmul.f32 -1.442695, %v1640_v26 }
 0x112   :  { %1312 = vpow2.f32 %v1112_v24  ;;  %v1114_v31 = vmul.f32 -1.442695, %v1644_v29  ;;  %v1649_v32 = vpop.f32.mrb[7].mxu0  ;;  %v1651_v33 = vpop.f32.mrb[7].mxu1 }
 0x113   :  { %1314 = vpow2.f32 %v1124_v21  ;;  %v1115_v3 = vmul.f32 -1.442695, %v1649_v32 }
 0x114   :  { %v1305_v35 = vpop.eup %1304  ;;  %1316 = vpow2.f32 %v1113_v28 }
 0x115   :  { %v587_v37 = vadd.f32 1.0, %v1305_v35  ;;  %1318 = vpow2.f32 %v1125_v27  ;;  %v1307_v38 = vpop.eup %1306 }
 0x116   :  { %1320 = vpow2.f32 %v1114_v31  ;;  %v588_v39 = vadd.f32 1.0, %v1307_v38  ;;  %v1309_v42 = vpop.eup %1308 }
 0x117   :  { %1322 = vpow2.f32 %v1126_v34  ;;  %v1655_v40 = vpop.f32.mrb[8].mxu0  ;;  %v1657_v41 = vpop.f32.mrb[8].mxu1  ;;  %v589_v45 = vadd.f32 1.0, %v1309_v42 }
 0x118   :  { %1324 = vpow2.f32 %v1127_v36  ;;  %v1660_v44 = vpop.f32.mrb[9].mxu0  ;;  %v1662_v46 = vpop.f32.mrb[9].mxu1  ;;  %v1116_v17 = vmul.f32 -1.442695, %v1655_v40 }
 0x119   :  { %1326 = vrcp.f32 %v587_v37  ;;  %v1664_v47 = vpop.f32.mrb[10].mxu0  ;;  %v1311_v48 = vpop.eup %1310  ;;  %v1117_v28 = vmul.f32 -1.442695, %v1660_v44 }
 0x11a   :  { %1328 = vrcp.f32 %v588_v39  ;;  %v1666_v49 = vpop.f32.mrb[10].mxu1  ;;  %v590_v50 = vadd.f32 1.0, %v1311_v48  ;;  %v1669_v52 = vpop.f32.mrb[11].mxu0  ;;  %v1118_v38 = vmul.f32 -1.442695, %v1664_v47 }
 0x11b   :  { %1330 = vrcp.f32 %v589_v45  ;;  %v1671_v53 = vpop.f32.mrb[11].mxu1 }
 0x11c   :  { %v1313_v54 = vpop.eup %1312  ;;  %1332 = vpow2.f32 %v1128_v43  ;;  %v1130_v43 = vmul.f32 -1.442695, %v1646_v30 }
 0x11d   :  { %v1315_v55 = vpop.eup %1314  ;;  %1334 = vrcp.f32 %v590_v50  ;;  %v591_v56 = vadd.f32 1.0, %v1313_v54 }
 0x11e   :  { %v1317_v57 = vpop.eup %1316  ;;  %1336 = vpow2.f32 %v1129_v51  ;;  %v603_v63 = vadd.f32 1.0, %v1315_v55 }
 0x11f   :  { %v1319_v58 = vpop.eup %1318  ;;  %v592_v59 = vadd.f32 1.0, %v1317_v57  ;;  %v1673_v60 = vpop.f32.mrb[12].mxu0  ;;  %1338 = vrcp.f32 %v591_v56 }
 0x120   :  { %v1675_v61 = vpop.f32.mrb[12].mxu1  ;;  %v1321_v62 = vpop.eup %1320  ;;  %v604_v7 = vadd.f32 1.0, %v1319_v58 }
 0x121   :  { %v1677_v0 = vpop.f32.mrb[13].mxu0  ;;  %v1323_v1 = vpop.eup %1322  ;;  %v593_v2 = vadd.f32 1.0, %v1321_v62  ;;  %1340 = vrcp.f32 %v592_v59 }
 0x122   :  { %v1680_v4 = vpop.f32.mrb[13].mxu1  ;;  %v1682_v5 = vpop.f32.mrb[14].mxu0  ;;  %v605_v24 = vadd.f32 1.0, %v1323_v1 }
 0x123   :  { %v1325_v6 = vpop.eup %1324  ;;  %v1684_v8 = vpop.f32.mrb[14].mxu1  ;;  %1342 = vrcp.f32 %v593_v2 }
 0x124   :  { %v1686_v11 = vpop.f32.mrb[15].mxu0  ;;  %v1327_v14 = vpop.eup %1326  ;;  %1344 = vrcp.f32 %v603_v63  ;;  %v606_v35 = vadd.f32 1.0, %v1325_v6 }
 0x125   :  { %v1689_v20 = vpop.f32.mrb[15].mxu1  ;;  %v1329_v21 = vpop.eup %1328  ;;  %1346 = vpow2.f32 %v1115_v3  ;;  %v683_v34 = vmul.f32 %v1327_v14, %v1612_v9  ;;  %v1119_v9 = vmul.f32 -1.442695, %v1669_v52 }
 0x126   :  { %v1331_v27 = vpop.eup %1330  ;;  %1348 = vrcp.f32 %v604_v7  ;;  %v684_v37 = vmul.f32 %v1329_v21, %v1617_v12  ;;  %v1132_v21 = vmul.f32 -1.442695, %v1657_v41 }
 0x127   :  { %v1333_v31 = vpop.eup %1332  ;;  %1350 = vpow2.f32 %v1116_v17  ;;  %v412_v39 = vpop.f32.mrb[16].mxu1  ;;  %v685_v42 = vmul.f32 %v1331_v27, %v1622_v15  ;;  %v1120_v15 = vmul.f32 -1.442695, %v1673_v60 }
 0x128   :  { %v1335_v36 = vpop.eup %1334  ;;  %1352 = vrcp.f32 %v605_v24  ;;  %v715_v45 = vmul.f32 %v683_v34, %v412_v39  ;;  %v414_v48 = vpop.f32.mrb[17].mxu1  ;;  %v607_v12 = vadd.f32 1.0, %v1333_v31 }
 0x129   :  { %v1337_v50 = vpop.eup %1336  ;;  %v686_v51 = vmul.f32 %v1335_v36, %v1627_v18  ;;  %1354 = vpow2.f32 %v1117_v28  ;;  %v716_v54 = vmul.f32 %v684_v37, %v414_v48  ;;  %v416_v55 = vpop.f32.mrb[18].mxu1  ;;  %v1131_v18 = vmul.f32 -1.442695, %v1651_v33 }
 0x12a   :  { %1356 = vrcp.f32 %v606_v35  ;;  %v717_v56 = vmul.f32 %v685_v42, %v416_v55  ;;  %v418_v57 = vpop.f32.mrb[19].mxu1  ;;  %v1339_v58 = vpop.eup %1338  ;;  %v608_v63 = vadd.f32 1.0, %v1337_v50  ;;  %v1133_v36 = vmul.f32 -1.442695, %v1662_v46 }
 0x12b   :  { %1358 = vpow2.f32 %v1118_v38  ;;  %v718_v59 = vmul.f32 %v686_v51, %v418_v57  ;;  %v1341_v62 = vpop.eup %1340  ;;  %v687_v7 = vmul.f32 %v1339_v58, %v1633_v22  ;;  %v1136_v57 = vmul.f32 -1.442695, %v1675_v61 }
 0x12c   :  { %1360 = vpow2.f32 %v1130_v43  ;;  %v763_v1 = vpack.c.bf16 %v717_v56, %v715_v45  ;;  %v688_v17 = vmul.f32 %v1341_v62, %v1638_v25  ;;  %v1134_v45 = vmul.f32 -1.442695, %v1666_v49 }
 0x12d   :  { %v1343_v2 = vpop.eup %1342  ;;  %1362 = vpow2.f32 %v1119_v9  ;;  %v764_v3 = vpack.c.bf16 %v718_v59, %v716_v54  ;;  %v1135_v54 = vmul.f32 -1.442695, %v1671_v53 }
 0x12e   :  { %v1701_v6 = vpop.eup %1344  ;;  %1364 = vrcp.f32 %v607_v12  ;;  %v689_v28 = vmul.f32 %v1343_v2, %v1644_v29 }
 0x12f   :  { %v1347_v14 = vpop.eup %1346  ;;  %1366 = vpow2.f32 %v1120_v15  ;;  %v422_v24 = vpop.f32.mrb[20].mxu1  ;;  %939 = vmatprep.mubr.bf16.mxu0 %v764_v3 }
 0x130   :  { %v1706_v27 = vpop.eup %1348  ;;  %1368 = vrcp.f32 %v608_v63  ;;  %v594_v31 = vadd.f32 1.0, %v1347_v14  ;;  %v1709_v34 = vmul.f32 %v687_v7, %v422_v24  ;;  %v424_v35 = vpop.f32.mrb[21].mxu1  ;;  %940 = vmatmul.mubr.bf16.vlgmr.msra.gmra.mrb[16].mxu0 %v763_v1  ;;  %v1121_v7 = vmul.f32 -1.442695, %v1677_v0 }
 0x131   :  { %v1351_v22 = vpop.eup %1350  ;;  %1370 = vpow2.f32 %v1131_v18  ;;  %v1712_v25 = vmul.f32 %v688_v17, %v424_v35  ;;  %v426_v37 = vpop.f32.mrb[22].mxu1 }
 0x132   :  { %v1714_v38 = vpop.eup %1352  ;;  %1372 = vrcp.f32 %v594_v31  ;;  %v595_v39 = vadd.f32 1.0, %v1351_v22  ;;  %v1716_v42 = vmul.f32 %v689_v28, %v426_v37  ;;  %v428_v43 = vpop.f32.mrb[23].mxu1  ;;  %v1122_v28 = vmul.f32 -1.442695, %v1682_v5 }
 0x133   :  { %v1355_v29 = vpop.eup %1354  ;;  %1374 = vpow2.f32 %v1132_v21  ;;  %v1137_v21 = vmul.f32 -1.442695, %v1680_v4  ;;  %v1138_v22 = vmul.f32 -1.442695, %v1684_v8  ;;  %v1123_v37 = vmul.f32 -1.442695, %v1686_v11 }
 0x134   :  { %v1719_v48 = vpop.eup %1356  ;;  %1376 = vrcp.f32 %v595_v39  ;;  %v596_v50 = vadd.f32 1.0, %v1355_v29  ;;  %v765_v51 = vpack.c.bf16 %v1716_v42, %v1709_v34 }
 0x135   :  { %v1359_v9 = vpop.eup %1358  ;;  %1378 = vpow2.f32 %v1133_v36 }
 0x136   :  { %v1361_v55 = vpop.eup %1360  ;;  %1380 = vrcp.f32 %v596_v50  ;;  %v597_v12 = vadd.f32 1.0, %v1359_v9 }
 0x137   :  { %v1363_v56 = vpop.eup %1362  ;;  %1382 = vpow2.f32 %v1134_v45  ;;  %v432_v58 = vpop.f32.mrb[24].mxu1  ;;  %v609_v1 = vadd.f32 1.0, %v1361_v55  ;;  %v1139_v45 = vmul.f32 -1.442695, %v1689_v20 }
 0x138   :  { %v1725_v15 = vpop.eup %1364  ;;  %1384 = vrcp.f32 %v597_v12  ;;  %v598_v59 = vadd.f32 1.0, %v1363_v56  ;;  %v434_v62 = vpop.f32.mrb[25].mxu1 }
 0x139   :  { %v1367_v63 = vpop.eup %1366  ;;  %1386 = vpow2.f32 %v1135_v54  ;;  %v436_v2 = vpop.f32.mrb[26].mxu1 }
 0x13a   :  { %v1727_v18 = vpop.eup %1368  ;;  %1388 = vrcp.f32 %v598_v59  ;;  %v599_v3 = vadd.f32 1.0, %v1367_v63  ;;  %v438_v14 = vpop.f32.mrb[27].mxu1 }
 0x13b   :  { %v1371_v17 = vpop.eup %1370  ;;  %1390 = vpow2.f32 %v1136_v57 }
 0x13c   :  { %v1373_v24 = vpop.eup %1372  ;;  %1392 = vrcp.f32 %v599_v3  ;;  %v610_v55 = vadd.f32 1.0, %v1371_v17 }
 0x13d   :  { %v1375_v31 = vpop.eup %1374  ;;  %1394 = vrcp.f32 %v609_v1  ;;  %v690_v35 = vmul.f32 %v1373_v24, %v1649_v32 }
 0x13e   :  { %v1377_v36 = vpop.eup %1376  ;;  %1396 = vpow2.f32 %v1121_v7  ;;  %v611_v3 = vadd.f32 1.0, %v1375_v31  ;;  %v699_v31 = vmul.f32 %v1701_v6, %v1614_v10 }
 0x13f   :  { %v1379_v39 = vpop.eup %1378  ;;  %v691_v29 = vmul.f32 %v1377_v36, %v1655_v40  ;;  %1398 = vpow2.f32 %v1137_v21  ;;  %v722_v50 = vmul.f32 %v690_v35, %v428_v43  ;;  %v442_v9 = vpop.f32.mrb[28].mxu1 }
 0x140   :  { %v1381_v54 = vpop.eup %1380  ;;  %1400 = vpow2.f32 %v1122_v28  ;;  %v1737_v12 = vpop.f32.mrb[29].mxu1 }
 0x141   :  { %v1383_v32 = vpop.eup %1382  ;;  %v692_v56 = vmul.f32 %v1381_v54, %v1660_v44  ;;  %1402 = vpow2.f32 %v1138_v22  ;;  %v766_v57 = vpack.c.bf16 %v722_v50, %v1712_v25  ;;  %v723_v59 = vmul.f32 %v691_v29, %v432_v58  ;;  %v1741_v63 = vpop.f32.mrb[30].mxu1 }
 0x142   :  { %v1385_v40 = vpop.eup %1384  ;;  %1404 = vpow2.f32 %v1123_v37  ;;  %v1743_v1 = vpop.f32.mrb[31].mxu1  ;;  %v612_v44 = vadd.f32 1.0, %v1379_v39  ;;  %v613_v35 = vadd.f32 1.0, %v1383_v32 }
 0x143   :  { %v1387_v43 = vpop.eup %1386  ;;  %v693_v7 = vmul.f32 %v1385_v40, %v1664_v47  ;;  %1406 = vpow2.f32 %v1139_v45  ;;  %947 = vmatprep.mubr.bf16.mxu0 %v766_v57  ;;  %v724_v17 = vmul.f32 %v692_v56, %v434_v62  ;;  %v700_v47 = vmul.f32 %v1706_v27, %v1619_v13 }
 0x144   :  { %v1389_v21 = vpop.eup %1388  ;;  %1408 = vrcp.f32 %v610_v55  ;;  %948 = vmatmul.mubr.bf16.gmra.mrb[20].mxu0 %v765_v51  ;;  %v701_v62 = vmul.f32 %v1714_v38, %v1624_v16  ;;  %v614_v10 = vadd.f32 1.0, %v1387_v43  ;;  %v703_v40 = vmul.f32 %v1725_v15, %v1635_v23 }
 0x145   :  { %v1391_v25 = vpop.eup %1390  ;;  %v694_v58 = vmul.f32 %v1389_v21, %v1669_v52  ;;  %v725_v24 = vmul.f32 %v693_v7, %v436_v2  ;;  %1410 = vrcp.f32 %v611_v3  ;;  %v702_v2 = vmul.f32 %v1719_v48, %v1629_v19 }
 0x146   :  { %v1393_v28 = vpop.eup %1392  ;;  %1412 = vrcp.f32 %v612_v44  ;;  %v615_v32 = vadd.f32 1.0, %v1391_v25  ;;  %v704_v3 = vmul.f32 %v1727_v18, %v1640_v26 }
 0x147   :  { %v1395_v22 = vpop.eup %1394  ;;  %v695_v34 = vmul.f32 %v1393_v28, %v1673_v60  ;;  %v767_v42 = vpack.c.bf16 %v725_v24, %v723_v59  ;;  %v726_v51 = vmul.f32 %v694_v58, %v438_v14  ;;  %v452_v36 = vpop.f32.mrb[32].mxu1  ;;  %1414 = vrcp.f32 %v613_v35 }
 0x148   :  { %v1397_v52 = vpop.eup %1396  ;;  %v1759_v6 = vmul.f32 %v699_v31, %v452_v36  ;;  %v454_v13 = vpop.f32.mrb[33].mxu1  ;;  %v705_v21 = vmul.f32 %v1395_v22, %v1646_v30 }
 0x149   :  { %v1399_v27 = vpop.eup %1398  ;;  %v600_v37 = vadd.f32 1.0, %v1397_v52  ;;  %v768_v16 = vpack.c.bf16 %v726_v51, %v724_v17  ;;  %v1761_v38 = vmul.f32 %v695_v34, %v442_v9  ;;  %v1763_v39 = vmul.f32 %v700_v47, %v454_v13  ;;  %v456_v60 = vpop.f32.mrb[34].mxu1 }
 0x14a   :  { %v1401_v29 = vpop.eup %1400  ;;  %v1765_v14 = vmul.f32 %v701_v62, %v456_v60  ;;  %v458_v45 = vpop.f32.mrb[35].mxu1  ;;  %v616_v43 = vadd.f32 1.0, %v1399_v27 }
 0x14b   :  { %v1403_v50 = vpop.eup %1402  ;;  %1416 = vrcp.f32 %v600_v37  ;;  %v601_v19 = vadd.f32 1.0, %v1401_v29  ;;  %955 = vmatprep.mubr.bf16.mxu0 %v768_v16  ;;  %v1767_v48 = vmul.f32 %v702_v2, %v458_v45 }
 0x14c   :  { %v1405_v54 = vpop.eup %1404  ;;  %1418 = vrcp.f32 %v614_v10  ;;  %956 = vmatmul.mubr.bf16.gmra.mrb[24].mxu0 %v767_v42  ;;  %v771_v9 = vpack.c.bf16 %v1765_v14, %v1759_v6  ;;  %v617_v7 = vadd.f32 1.0, %v1403_v50 }
 0x14d   :  { %v1407_v55 = vpop.eup %1406  ;;  %1420 = vrcp.f32 %v601_v19  ;;  %v602_v56 = vadd.f32 1.0, %v1405_v54  ;;  %v772_v57 = vpack.c.bf16 %v1767_v48, %v1763_v39 }
 0x14e   :  { %v1409_v59 = vpop.eup %1408  ;;  %v618_v44 = vadd.f32 1.0, %v1407_v55 }
 0x14f   :  { %1422 = vrcp.f32 %v602_v56  ;;  %v462_v17 = vpop.f32.mrb[36].mxu1  ;;  %v1411_v24 = vpop.eup %1410  ;;  %v706_v28 = vmul.f32 %v1409_v59, %v1651_v33 }
 0x150   :  { %v1778_v25 = vmul.f32 %v703_v40, %v462_v17  ;;  %v464_v58 = vpop.f32.mrb[37].mxu1  ;;  %1424 = vrcp.f32 %v615_v32  ;;  %v1413_v23 = vpop.eup %1412  ;;  %v707_v42 = vmul.f32 %v1411_v24, %v1657_v41 }
 0x151   :  { %v736_v31 = vmul.f32 %v704_v3, %v464_v58  ;;  %v466_v47 = vpop.f32.mrb[38].mxu1  ;;  %1426 = vrcp.f32 %v616_v43  ;;  %v1415_v18 = vpop.eup %1414  ;;  %v708_v36 = vmul.f32 %v1413_v23, %v1662_v46 }
 0x152   :  { %v737_v15 = vmul.f32 %v705_v21, %v466_v47  ;;  %v468_v62 = vpop.f32.mrb[39].mxu1  ;;  %1428 = vrcp.f32 %v617_v7  ;;  %v709_v2 = vmul.f32 %v1415_v18, %v1666_v49 }
 0x153   :  { %v738_v26 = vmul.f32 %v706_v28, %v468_v62  ;;  %1430 = vrcp.f32 %v618_v44 }
 0x154   :  { %v773_v30 = vpack.c.bf16 %v737_v15, %v1778_v25 }
 0x155   :  { %v1417_v35 = vpop.eup %1416  ;;  %v774_v22 = vpack.c.bf16 %v738_v26, %v736_v31 }
 0x156   :  { %v1419_v34 = vpop.eup %1418  ;;  %v696_v33 = vmul.f32 %v1417_v35, %v1677_v0 }
 0x157   :  { %v1421_v51 = vpop.eup %1420  ;;  %v472_v52 = vpop.f32.mrb[40].mxu1  ;;  %v710_v60 = vmul.f32 %v1419_v34, %v1671_v53 }
 0x158   :  { %v697_v10 = vmul.f32 %v1421_v51, %v1682_v5  ;;  %v728_v13 = vmul.f32 %v696_v33, %v1737_v12  ;;  %v739_v27 = vmul.f32 %v707_v42, %v472_v52  ;;  %v474_v37 = vpop.f32.mrb[41].mxu1 }
 0x159   :  { %v1423_v16 = vpop.eup %1422  ;;  %v740_v29 = vmul.f32 %v708_v36, %v474_v37  ;;  %v476_v45 = vpop.f32.mrb[42].mxu1 }
 0x15a   :  { %v698_v41 = vmul.f32 %v1423_v16, %v1686_v11  ;;  %v729_v0 = vmul.f32 %v697_v10, %v1741_v63  ;;  %v741_v50 = vmul.f32 %v709_v2, %v476_v45  ;;  %v478_v46 = vpop.f32.mrb[43].mxu1  ;;  %v1425_v19 = vpop.eup %1424 }
 0x15b   :  { %v742_v54 = vmul.f32 %v710_v60, %v478_v46  ;;  %v1427_v49 = vpop.eup %1426  ;;  %v711_v53 = vmul.f32 %v1425_v19, %v1675_v61 }
 0x15c   :  { %v769_v5 = vpack.c.bf16 %v729_v0, %v1761_v38  ;;  %v730_v12 = vmul.f32 %v698_v41, %v1743_v1  ;;  %v775_v55 = vpack.c.bf16 %v741_v50, %v739_v27  ;;  %v1429_v32 = vpop.eup %1428  ;;  %v712_v11 = vmul.f32 %v1427_v49, %v1680_v4 }
 0x15d   :  { %v776_v56 = vpack.c.bf16 %v742_v54, %v740_v29  ;;  %v1431_v59 = vpop.eup %1430  ;;  %v713_v63 = vmul.f32 %v1429_v32, %v1684_v8 }
 0x15e   :  { %v770_v40 = vpack.c.bf16 %v730_v12, %v728_v13  ;;  %v714_v17 = vmul.f32 %v1431_v59, %v1689_v20 }
 0x15f   :  { %v482_v43 = vpop.f32.mrb[44].mxu1 }
 0x160   :  { %963 = vmatprep.mubr.bf16.mxu0 %v770_v40  ;;  %v743_v3 = vmul.f32 %v711_v53, %v482_v43  ;;  %v484_v7 = vpop.f32.mrb[45].mxu1 }
 0x161   :  { %964 = vmatmul.mubr.bf16.gmra.mrb[28].mxu0 %v769_v5  ;;  %v744_v38 = vmul.f32 %v712_v11, %v484_v7  ;;  %v486_v1 = vpop.f32.mrb[46].mxu1 }
 0x162   :  { %971 = vmatprep.mubr.bf16.mxu0 %v772_v57  ;;  %v745_v21 = vmul.f32 %v713_v63, %v486_v1  ;;  %v488_v61 = vpop.f32.mrb[47].mxu1 }
 0x163   :  { %v746_v44 = vmul.f32 %v714_v17, %v488_v61 }
 0x164   :  { %v777_v25 = vpack.c.bf16 %v745_v21, %v743_v3 }
 0x165   :  { %v778_v4 = vpack.c.bf16 %v746_v44, %v744_v38 }
 0x169   :  { %972 = vmatmul.mubr.bf16.gmra.mrb[32].mxu0 %v771_v9 }
 0x16a   :  { %979 = vmatprep.mubr.bf16.mxu0 %v774_v22 }
 0x171   :  { %980 = vmatmul.mubr.bf16.gmra.mrb[36].mxu0 %v773_v30 }
 0x172   :  { %987 = vmatprep.mubr.bf16.mxu0 %v776_v56 }
 0x179   :  { %988 = vmatmul.mubr.bf16.gmra.mrb[40].mxu0 %v775_v55 }
 0x17a   :  { %995 = vmatprep.mubr.bf16.mxu0 %v778_v4 }
 0x181   :  { %996 = vmatmul.mubr.bf16.gmra.mrb[44].mxu0 %v777_v25 }
 0x203   :  { %v1172_v8 = vpop.f32.mrb[16].mxu0 }
 0x204   :  { %v1173_v20 = vpop.f32.mrb[17].mxu0 }
 0x205   :  { %v1174_v58 = vadd.f32 %v1173_v20, %v1172_v8  ;;  %v1175_v39 = vpop.f32.mrb[18].mxu0 }
 0x206   :  { %v1176_v48 = vpop.f32.mrb[19].mxu0 }
 0x207   :  { %1055 = vst [vmem:[%s1854_s3] sm:$0xff] %v1174_v58  ;;  %v1177_v57 = vadd.f32 %v1176_v48, %v1175_v39 }
 0x209   :  { %1056 = vst [vmem:[%s1854_s3 + $0x8] sm:$0xff] %v1177_v57 }
 0x217   :  { %v1178_v6 = vpop.f32.mrb[20].mxu0 }
 0x218   :  { %v1179_v14 = vpop.f32.mrb[21].mxu0 }
 0x219   :  { %v1180_v9 = vadd.f32 %v1179_v14, %v1178_v6  ;;  %v1181_v24 = vpop.f32.mrb[22].mxu0 }
 0x21a   :  { %v1182_v28 = vpop.f32.mrb[23].mxu0 }
 0x21b   :  { %1057 = vst [vmem:[%s1854_s3 + $0x10] sm:$0xff] %v1180_v9  ;;  %v1183_v31 = vadd.f32 %v1182_v28, %v1181_v24 }
 0x21d   :  { %1058 = vst [vmem:[%s1854_s3 + $0x18] sm:$0xff] %v1183_v31 }
 0x21f   :  { %v1184_v47 = vpop.f32.mrb[24].mxu0 }
 0x220   :  { %v1185_v23 = vpop.f32.mrb[25].mxu0 }
 0x221   :  { %v1186_v15 = vadd.f32 %v1185_v23, %v1184_v47  ;;  %v1187_v62 = vpop.f32.mrb[26].mxu0 }
 0x222   :  { %v1188_v26 = vpop.f32.mrb[27].mxu0 }
 0x223   :  { %1059 = vst [vmem:[%s1854_s3 + $0x20] sm:$0xff] %v1186_v15  ;;  %v1189_v18 = vadd.f32 %v1188_v26, %v1187_v62 }
 0x225   :  { %1060 = vst [vmem:[%s1854_s3 + $0x28] sm:$0xff] %v1189_v18 }
 0x234   :  { %v1190_v30 = vpop.f32.mrb[28].mxu0 }
 0x235   :  { %v1191_v35 = vpop.f32.mrb[29].mxu0 }
 0x236   :  { %v1192_v22 = vadd.f32 %v1191_v35, %v1190_v30  ;;  %v1193_v34 = vpop.f32.mrb[30].mxu0 }
 0x237   :  { %v1194_v42 = vpop.f32.mrb[31].mxu0 }
 0x238   :  { %1061 = vst [vmem:[%s1854_s3 + $0x30] sm:$0xff] %v1192_v22  ;;  %v1195_v33 = vadd.f32 %v1194_v42, %v1193_v34 }
 0x23a   :  { %1062 = vst [vmem:[%s1854_s3 + $0x38] sm:$0xff] %v1195_v33 }
 0x23c   :  { %v1196_v51 = vpop.f32.mrb[32].mxu0 }
 0x23d   :  { %v1197_v36 = vpop.f32.mrb[33].mxu0 }
 0x23e   :  { %v1198_v52 = vadd.f32 %v1197_v36, %v1196_v51  ;;  %v1199_v2 = vpop.f32.mrb[34].mxu0 }
 0x23f   :  { %v1200_v10 = vpop.f32.mrb[35].mxu0 }
 0x240   :  { %1063 = vst [vmem:[%s1854_s3 + $0x40] sm:$0xff] %v1198_v52  ;;  %v1201_v13 = vadd.f32 %v1200_v10, %v1199_v2 }
 0x242   :  { %1064 = vst [vmem:[%s1854_s3 + $0x48] sm:$0xff] %v1201_v13 }
 0x244   :  { %v1202_v27 = vpop.f32.mrb[36].mxu0 }
 0x245   :  { %v1203_v37 = vpop.f32.mrb[37].mxu0 }
 0x246   :  { %v1204_v16 = vadd.f32 %v1203_v37, %v1202_v27  ;;  %v1205_v60 = vpop.f32.mrb[38].mxu0 }
 0x247   :  { %v1206_v29 = vpop.f32.mrb[39].mxu0 }
 0x248   :  { %1065 = vst [vmem:[%s1854_s3 + $0x50] sm:$0xff] %v1204_v16  ;;  %v1207_v45 = vadd.f32 %v1206_v29, %v1205_v60 }
 0x24a   :  { %1066 = vst [vmem:[%s1854_s3 + $0x58] sm:$0xff] %v1207_v45 }
 0x24c   :  { %v1208_v41 = vpop.f32.mrb[40].mxu0 }
 0x24d   :  { %v1209_v0 = vpop.f32.mrb[41].mxu0 }
 0x24e   :  { %v1210_v50 = vadd.f32 %v1209_v0, %v1208_v41  ;;  %v1211_v46 = vpop.f32.mrb[42].mxu0 }
 0x24f   :  { %v1212_v19 = vpop.f32.mrb[43].mxu0 }
 0x250   :  { %1067 = vst [vmem:[%s1854_s3 + $0x60] sm:$0xff] %v1210_v50  ;;  %v1213_v54 = vadd.f32 %v1212_v19, %v1211_v46 }
 0x252   :  { %1068 = vst [vmem:[%s1854_s3 + $0x68] sm:$0xff] %v1213_v54 }
 0x254   :  { %v1214_v49 = vpop.f32.mrb[44].mxu0 }
 0x255   :  { %v1215_v5 = vpop.f32.mrb[45].mxu0 }
 0x256   :  { %v1216_v12 = vadd.f32 %v1215_v5, %v1214_v49  ;;  %v1217_v55 = vpop.f32.mrb[46].mxu0 }
 0x257   :  { %v1218_v32 = vpop.f32.mrb[47].mxu0 }
 0x258   :  { %1069 = vst [vmem:[%s1854_s3 + $0x70] sm:$0xff] %v1216_v12  ;;  %v1219_v56 = vadd.f32 %v1218_v32, %v1217_v55 }
 0x25a   :  { %1070 = vst [vmem:[%s1854_s3 + $0x78] sm:$0xff] %v1219_v56 }
 0x25b   :  { %1075 = vsyncpa [#allocation4], 1 }

</bundles_post_ra>
